<compile_context>
chip_gen: v5e
topology: v5e:2x2
jax: 0.10.0
libtpu: 0.0.40
codegen_flags: <defaults>
</compile_context>

<pallas_src>
import functools

import jax
import jax.numpy as jnp
from jax.experimental import pallas as pl
from jax.experimental.pallas import tpu as pltpu

_LANE = 128


def _round_up(x, m):
    return (x + m - 1) // m * m


def _make_mlp_kernel(fold_flags):
    """Fused kernel: per hidden block (Linear+ReLU, BN+ReLU) + output Linear.

    fold_flags[i] == True means the BN scale of hidden block i was folded into the
    weight/bias on the host, so the epilogue is just (+shift, ReLU).
    """

    def kernel(*refs):
        # refs = [x,
        #         per hidden block: (w_t[bf16], b[f32], [scale[f32]], shift[f32]),
        #         w_out_t[bf16], b_out[f32],
        #         o_ref]
        x_ref = refs[0]
        o_ref = refs[-1]
        idx = 1

        # bf16 into the MXU, f32 accumulation; cast happens in-kernel so x is read
        # from HBM exactly once in its original dtype.
        h = x_ref[...].astype(jnp.bfloat16)

        for folded in fold_flags:
            w_t = refs[idx][...]          # bf16 [K, H_pad]
            b = refs[idx + 1][...]        # f32  [1, H_pad]
            h32 = jnp.dot(h, w_t, preferred_element_type=jnp.float32) + b
            h32 = jnp.maximum(h32, 0.0)   # ReLU(Linear); Dropout(eval) is identity
            if folded:
                shift = refs[idx + 2][...]                    # f32 [1, H_pad]
                idx += 3
                h32 = jnp.maximum(h32 + shift, 0.0)           # ReLU(BN), scale folded
            else:
                scale = refs[idx + 2][...]                    # f32 [1, H_pad]
                shift = refs[idx + 3][...]
                idx += 4
                h32 = jnp.maximum(h32 * scale + shift, 0.0)   # ReLU(BN) (affine)
            h = h32.astype(jnp.bfloat16)

        w_out_t = refs[idx][...]          # bf16 [H_pad, C_pad]
        b_out = refs[idx + 1][...]        # f32  [1, C_pad]
        out = jnp.dot(h, w_out_t, preferred_element_type=jnp.float32) + b_out
        o_ref[...] = out.astype(o_ref.dtype)

    return kernel


def init_mlp_params(key, input_size, hidden_size, num_classes, hidden_count=1):
    """Deterministic parameter init mirroring the module's __init__ shapes.

    Hidden-layer weights use the module's `initializer=torch.nn.init.ones_`;
    biases / output layer use deterministic uniform init from the PRNGKey.
    """
    params = {"hidden": [], "out": None}
    in_dim = input_size
    out_dim = hidden_size
    for _ in range(hidden_count):
        assert out_dim >= 1, "hidden_size // 2 per block reached a degenerate 0-dim layer"
        key, kb = jax.random.split(key)
        bound = 1.0 / (in_dim ** 0.5)
        w = jnp.ones((out_dim, in_dim), jnp.float32)                       # ones_ init
        b = jax.random.uniform(kb, (out_dim,), jnp.float32, -bound, bound)
        gamma = jnp.ones((out_dim,), jnp.float32)                          # BN defaults
        beta = jnp.zeros((out_dim,), jnp.float32)
        running_mean = jnp.zeros((out_dim,), jnp.float32)
        running_var = jnp.ones((out_dim,), jnp.float32)
        params["hidden"].append((w, b, gamma, beta, running_mean, running_var))
        in_dim = out_dim
        out_dim = out_dim // 2

    key, kw, kb = jax.random.split(key, 3)
    bound = 1.0 / (in_dim ** 0.5)
    w_out = jax.random.uniform(kw, (num_classes, in_dim), jnp.float32, -bound, bound)
    b_out = jax.random.uniform(kb, (num_classes,), jnp.float32, -bound, bound)
    params["out"] = (w_out, b_out)
    return params


def flatten_params_for_kernel(params, eps=1e-5):
    """Prepare kernel params: lane-pad N dims, fold BN, bf16 weights.

    * The FIRST layer keeps its raw (unpadded) K dim so x can be streamed from HBM
      without any host-side pad/cast copy; later K dims match the previous layer's
      lane-padded output.
    * BN is folded to (scale, shift); when scale >= 0 it is further folded into the
      weight columns and bias (removes the per-element scale multiply in-kernel).
    * Padded feature lanes carry zeros everywhere so they contribute nothing and
      are sliced off the final output.

    Returns (flat_params_tuple, fold_flags_tuple).
    """
    flat = []
    fold_flags = []
    first = True
    for (w, b, gamma, beta, mean, var) in params["hidden"]:
        out_dim, in_dim = w.shape
        in_pad = in_dim if first else _round_up(in_dim, _LANE)
        out_pad = _round_up(out_dim, _LANE)

        scale = gamma * jax.lax.rsqrt(var + eps)
        shift = beta - mean * scale
        folded = bool(jnp.all(scale >= 0))        # host-side guard (negative gamma)
        if folded:
            w_eff = w * scale[:, None]
            b_eff = b * scale
        else:
            w_eff, b_eff = w, b

        w_t = jnp.zeros((in_pad, out_pad), jnp.bfloat16)
        w_t = w_t.at[:in_dim, :out_dim].set(w_eff.T.astype(jnp.bfloat16))

        def _padv(v, out_dim=out_dim, out_pad=out_pad):
            return jnp.zeros((1, out_pad), jnp.float32).at[0, :out_dim].set(
                v.astype(jnp.float32))

        if folded:
            flat += [w_t, _padv(b_eff), _padv(shift)]
        else:
            flat += [w_t, _padv(b_eff), _padv(scale), _padv(shift)]
        fold_flags.append(folded)
        first = False

    w_out, b_out = params["out"]
    c, in_dim = w_out.shape
    in_pad = in_dim if first else _round_up(in_dim, _LANE)
    c_pad = _round_up(c, _LANE)
    w_out_t = jnp.zeros((in_pad, c_pad), jnp.bfloat16)
    w_out_t = w_out_t.at[:in_dim, :c].set(w_out.T.astype(jnp.bfloat16))
    b_out_p = jnp.zeros((1, c_pad), jnp.float32).at[0, :c].set(b_out)
    flat += [w_out_t, b_out_p]
    return tuple(flat), tuple(fold_flags)


@functools.partial(jax.jit,
                   static_argnames=("num_classes", "fold_flags", "resident_params"))
def mlp_forward(x, flat_params, *, num_classes, fold_flags, resident_params=True):
    B, D = x.shape
    c_pad = int(flat_params[-1].shape[1])

    param_bytes = sum(int(p.size) * p.dtype.itemsize for p in flat_params)
    widest = max(int(p.shape[-1]) for p in flat_params)

    # ---- generation-aware VMEM budget ------------------------------------
    try:
        vmem_cap = int(pltpu.get_tpu_info().vmem_capacity_bytes)
    except Exception:
        vmem_cap = 64 << 20                       # conservative (v7x per-TC VMEM)
    # ~48 MiB ceiling on v7x (64 MiB physical), ~96 MiB on v5e/v6e (128 MiB).
    budget = min(vmem_cap * 3 // 4, vmem_cap - (16 << 20))

    def _vmem_est(tb):
        # Params single-buffered (pl.Buffered(1)); x/out tiles double-buffered;
        # headroom for the f32 intermediates of the widest layer.
        act = tb * (2 * D * 4 + 2 * c_pad * 4 + 4 * widest * 4)
        return param_bytes + act

    # ---- batch-tile selection ---------------------------------------------
    cap = 1024                                    # 128-multiple streaming tile cap
    while cap > 128 and _vmem_est(cap) > budget:
        cap //= 2

    if B > cap:
        tile_b = cap
        n_tiles = pl.cdiv(B, tile_b)              # ragged last tile is masked by Pallas
    elif B >= 256 and B % 16 == 0:
        tile_b, n_tiles = B // 2, 2               # >=2 tiles so v7x's 2 TCs both work
    else:
        tile_b, n_tiles = B, 1                    # full-extent block; no batch padding

    kernel = _make_mlp_kernel(fold_flags)

    # Weights/BN vectors stay VMEM-resident: constant block index across the grid,
    # single pipeline buffer (no wasted second copy).
    resident_mode = pl.Buffered(buffer_count=1) if resident_params else None
    in_specs = [pl.BlockSpec((tile_b, D), lambda i: (i, 0))]
    for p in flat_params:
        in_specs.append(pl.BlockSpec(p.shape, lambda i: (0, 0),
                                     pipeline_mode=resident_mode))
    out_spec = pl.BlockSpec((tile_b, c_pad), lambda i: (i, 0))

    # ---- advisory cost estimate for the XLA scheduler ----------------------
    flops = 0
    prev = D
    pi = 0
    for folded in fold_flags:
        h_dim = int(flat_params[pi].shape[1])
        flops += 2 * B * prev * h_dim
        prev = h_dim
        pi += 3 if folded else 4
    flops += 2 * B * prev * c_pad
    bytes_accessed = B * D * x.dtype.itemsize + param_bytes + B * c_pad * 4

    vmem_limit = int(min(vmem_cap - (8 << 20),
                         max(32 << 20, _vmem_est(tile_b) + (4 << 20))))

    out = pl.pallas_call(
        kernel,
        out_shape=jax.ShapeDtypeStruct((B, c_pad), x.dtype),
        grid=(n_tiles,),
        in_specs=in_specs,
        out_specs=out_spec,
        compiler_params=pltpu.CompilerParams(
            dimension_semantics=("parallel",),    # megacore sharding on v7x
            vmem_limit_bytes=vmem_limit),
        cost_estimate=pl.CostEstimate(
            flops=int(flops), transcendentals=0, bytes_accessed=int(bytes_accessed)),
    )(x, *flat_params)

    return out[:, :num_classes]


def mlp_reference(x, params, eps=1e-5):
    """Pure-JAX eval-mode reference (mirrors the kernel's bf16 MXU inputs)."""
    h = x
    for (w, b, gamma, beta, mean, var) in params["hidden"]:
        h = jnp.dot(h.astype(jnp.bfloat16), w.T.astype(jnp.bfloat16),
                    preferred_element_type=jnp.float32) + b
        h = jnp.maximum(h, 0.0)                      # ReLU(Linear); Dropout-eval = id
        h = jnp.maximum((h - mean) * jax.lax.rsqrt(var + eps) * gamma + beta, 0.0)
    w_out, b_out = params["out"]
    return jnp.dot(h.astype(jnp.bfloat16), w_out.T.astype(jnp.bfloat16),
                   preferred_element_type=jnp.float32) + b_out


if __name__ == "__main__":
    # Small shapes consistent with the module: x is [batch, input_size].
    batch, input_size, hidden_size, num_classes, hidden_count = 8, 32, 32, 8, 1

    key = jax.random.PRNGKey(0)
    key, kx = jax.random.split(key)
    x = jax.random.normal(kx, (batch, input_size), jnp.float32)

    params = init_mlp_params(key, input_size, hidden_size, num_classes, hidden_count)
    flat_params, fold_flags = flatten_params_for_kernel(params)

    try:
        out = mlp_forward(x, flat_params, num_classes=num_classes,
                          fold_flags=fold_flags, resident_params=True)
        out = jax.block_until_ready(out)
    except Exception:
        # Fallback if this JAX build rejects single-buffered (pl.Buffered(1)) inputs.
        out = mlp_forward(x, flat_params, num_classes=num_classes,
                          fold_flags=fold_flags, resident_params=False)
        out = jax.block_until_ready(out)

    assert out.shape == (batch, num_classes) and out.dtype == jnp.float32

    ref = mlp_reference(x, params)
    assert jnp.allclose(out, ref, rtol=2e-2, atol=2e-2), float(
        jnp.max(jnp.abs(out - ref)))
    print("KERNEL_OK")
</pallas_src>

<mosaic_0001>
module attributes {stable_mosaic.version = 11 : i64} {
  func.func @kernel(%arg0: i32, %arg1: memref<8x32xf32, #tpu.memory_space<vmem>>, %arg2: memref<32x128xbf16, #tpu.memory_space<vmem>>, %arg3: memref<1x128xf32, #tpu.memory_space<vmem>>, %arg4: memref<1x128xf32, #tpu.memory_space<vmem>>, %arg5: memref<128x128xbf16, #tpu.memory_space<vmem>>, %arg6: memref<1x128xf32, #tpu.memory_space<vmem>>, %arg7: memref<8x128xf32, #tpu.memory_space<vmem>>) attributes {dimension_semantics = [#tpu.dimension_semantics<parallel>], iteration_bounds = array<i64: 1>, scalar_prefetch = 0 : i64, scratch_operands = 0 : i64, tpu.core_type = #tpu.core_type<tc>, window_params = [{transform_indices = @transform_0, window_bounds = array<i64: 8, 32>}, {pipeline_mode = #tpu.pipeline_mode<synchronous>, transform_indices = @transform_1, window_bounds = array<i64: 32, 128>}, {pipeline_mode = #tpu.pipeline_mode<synchronous>, transform_indices = @transform_2, window_bounds = array<i64: 1, 128>}, {pipeline_mode = #tpu.pipeline_mode<synchronous>, transform_indices = @transform_3, window_bounds = array<i64: 1, 128>}, {pipeline_mode = #tpu.pipeline_mode<synchronous>, transform_indices = @transform_4, window_bounds = array<i64: 128, 128>}, {pipeline_mode = #tpu.pipeline_mode<synchronous>, transform_indices = @transform_5, window_bounds = array<i64: 1, 128>}, {transform_indices = @transform_6, window_bounds = array<i64: 8, 128>}]} {
    %c0 = arith.constant 0 : index
    %c0_0 = arith.constant 0 : index
    %0 = vector.load %arg1[%c0, %c0_0] : memref<8x32xf32, #tpu.memory_space<vmem>>, vector<8x32xf32>
    %1 = arith.truncf %0 : vector<8x32xf32> to vector<8x32xbf16>
    %c0_1 = arith.constant 0 : index
    %c0_2 = arith.constant 0 : index
    %2 = vector.load %arg2[%c0_1, %c0_2] : memref<32x128xbf16, #tpu.memory_space<vmem>>, vector<32x128xbf16>
    %c0_3 = arith.constant 0 : index
    %c0_4 = arith.constant 0 : index
    %3 = vector.load %arg3[%c0_3, %c0_4] : memref<1x128xf32, #tpu.memory_space<vmem>>, vector<1x128xf32>
    %cst = arith.constant dense<0.000000e+00> : vector<8x128xf32>
    %4 = tpu.matmul %1, %2, %cst {dimension_numbers = #tpu.dot_dimension_numbers<[1], [0], [0], [1], [0, 0, 1, 1], [], []>} : vector<8x32xbf16>, vector<32x128xbf16>, vector<8x128xf32> -> vector<8x128xf32>
    %5 = vector.broadcast %3 : vector<1x128xf32> to vector<8x128xf32>
    %6 = arith.addf %4, %5 : vector<8x128xf32>
    %cst_5 = arith.constant 0.000000e+00 : f32
    %7 = vector.broadcast %cst_5 : f32 to vector<8x128xf32>
    %8 = arith.maximumf %6, %7 : vector<8x128xf32>
    %c0_6 = arith.constant 0 : index
    %c0_7 = arith.constant 0 : index
    %9 = vector.load %arg4[%c0_6, %c0_7] : memref<1x128xf32, #tpu.memory_space<vmem>>, vector<1x128xf32>
    %10 = vector.broadcast %9 : vector<1x128xf32> to vector<8x128xf32>
    %11 = arith.addf %8, %10 : vector<8x128xf32>
    %cst_8 = arith.constant 0.000000e+00 : f32
    %12 = vector.broadcast %cst_8 : f32 to vector<8x128xf32>
    %13 = arith.maximumf %11, %12 : vector<8x128xf32>
    %14 = arith.truncf %13 : vector<8x128xf32> to vector<8x128xbf16>
    %c0_9 = arith.constant 0 : index
    %c0_10 = arith.constant 0 : index
    %15 = vector.load %arg5[%c0_9, %c0_10] : memref<128x128xbf16, #tpu.memory_space<vmem>>, vector<128x128xbf16>
    %c0_11 = arith.constant 0 : index
    %c0_12 = arith.constant 0 : index
    %16 = vector.load %arg6[%c0_11, %c0_12] : memref<1x128xf32, #tpu.memory_space<vmem>>, vector<1x128xf32>
    %cst_13 = arith.constant dense<0.000000e+00> : vector<8x128xf32>
    %17 = tpu.matmul %14, %15, %cst_13 {dimension_numbers = #tpu.dot_dimension_numbers<[1], [0], [0], [1], [0, 0, 1, 1], [], []>} : vector<8x128xbf16>, vector<128x128xbf16>, vector<8x128xf32> -> vector<8x128xf32>
    %18 = vector.broadcast %16 : vector<1x128xf32> to vector<8x128xf32>
    %19 = arith.addf %17, %18 : vector<8x128xf32>
    %c0_14 = arith.constant 0 : index
    %c0_15 = arith.constant 0 : index
    %20 = vector.load %arg7[%c0_14, %c0_15] : memref<8x128xf32, #tpu.memory_space<vmem>>, vector<8x128xf32>
    tpu.vector_store %arg7[%c0_14, %c0_15], %19 {strides = array<i32>} : memref<8x128xf32, #tpu.memory_space<vmem>>, vector<8x128xf32>,
    return
  }
  func.func @transform_0(%arg0: i32) -> (i32, i32) {
    %c0_i32 = arith.constant 0 : i32
    %c0_i32_0 = arith.constant 0 : i32
    return %arg0, %c0_i32 : i32, i32
  }
  func.func @transform_1(%arg0: i32) -> (i32, i32) {
    %c0_i32 = arith.constant 0 : i32
    %c0_i32_0 = arith.constant 0 : i32
    %c0_i32_1 = arith.constant 0 : i32
    return %c0_i32, %c0_i32_0 : i32, i32
  }
  func.func @transform_2(%arg0: i32) -> (i32, i32) {
    %c0_i32 = arith.constant 0 : i32
    %c0_i32_0 = arith.constant 0 : i32
    %c0_i32_1 = arith.constant 0 : i32
    return %c0_i32, %c0_i32_0 : i32, i32
  }
  func.func @transform_3(%arg0: i32) -> (i32, i32) {
    %c0_i32 = arith.constant 0 : i32
    %c0_i32_0 = arith.constant 0 : i32
    %c0_i32_1 = arith.constant 0 : i32
    return %c0_i32, %c0_i32_0 : i32, i32
  }
  func.func @transform_4(%arg0: i32) -> (i32, i32) {
    %c0_i32 = arith.constant 0 : i32
    %c0_i32_0 = arith.constant 0 : i32
    %c0_i32_1 = arith.constant 0 : i32
    return %c0_i32, %c0_i32_0 : i32, i32
  }
  func.func @transform_5(%arg0: i32) -> (i32, i32) {
    %c0_i32 = arith.constant 0 : i32
    %c0_i32_0 = arith.constant 0 : i32
    %c0_i32_1 = arith.constant 0 : i32
    return %c0_i32, %c0_i32_0 : i32, i32
  }
  func.func @transform_6(%arg0: i32) -> (i32, i32) {
    %c0_i32 = arith.constant 0 : i32
    %c0_i32_0 = arith.constant 0 : i32
    return %arg0, %c0_i32 : i32, i32
  }
}

module attributes {stable_mosaic.version = 11 : i64} {
  func.func @kernel(%arg0: i32, %arg1: memref<8x32xf32, #tpu.memory_space<vmem>>, %arg2: memref<32x128xbf16, #tpu.memory_space<vmem>>, %arg3: memref<1x128xf32, #tpu.memory_space<vmem>>, %arg4: memref<1x128xf32, #tpu.memory_space<vmem>>, %arg5: memref<128x128xbf16, #tpu.memory_space<vmem>>, %arg6: memref<1x128xf32, #tpu.memory_space<vmem>>, %arg7: memref<8x128xf32, #tpu.memory_space<vmem>>) attributes {dimension_semantics = [#tpu.dimension_semantics<parallel>], iteration_bounds = array<i64: 1>, scalar_prefetch = 0 : i64, scratch_operands = 0 : i64, tpu.core_type = #tpu.core_type<tc>, window_params = [{transform_indices = @transform_0, window_bounds = array<i64: 8, 32>}, {pipeline_mode = #tpu.pipeline_mode<synchronous>, transform_indices = @transform_1, window_bounds = array<i64: 32, 128>}, {pipeline_mode = #tpu.pipeline_mode<synchronous>, transform_indices = @transform_2, window_bounds = array<i64: 1, 128>}, {pipeline_mode = #tpu.pipeline_mode<synchronous>, transform_indices = @transform_3, window_bounds = array<i64: 1, 128>}, {pipeline_mode = #tpu.pipeline_mode<synchronous>, transform_indices = @transform_4, window_bounds = array<i64: 128, 128>}, {pipeline_mode = #tpu.pipeline_mode<synchronous>, transform_indices = @transform_5, window_bounds = array<i64: 1, 128>}, {transform_indices = @transform_6, window_bounds = array<i64: 8, 128>}]} {
    %c0 = arith.constant 0 : index
    %c0_0 = arith.constant 0 : index
    %0 = vector.load %arg1[%c0, %c0_0] : memref<8x32xf32, #tpu.memory_space<vmem>>, vector<8x32xf32>
    %1 = arith.truncf %0 : vector<8x32xf32> to vector<8x32xbf16>
    %c0_1 = arith.constant 0 : index
    %c0_2 = arith.constant 0 : index
    %2 = vector.load %arg2[%c0_1, %c0_2] : memref<32x128xbf16, #tpu.memory_space<vmem>>, vector<32x128xbf16>
    %c0_3 = arith.constant 0 : index
    %c0_4 = arith.constant 0 : index
    %3 = vector.load %arg3[%c0_3, %c0_4] : memref<1x128xf32, #tpu.memory_space<vmem>>, vector<1x128xf32>
    %cst = arith.constant dense<0.000000e+00> : vector<8x128xf32>
    %4 = tpu.matmul %1, %2, %cst {dimension_numbers = #tpu.dot_dimension_numbers<[1], [0], [0], [1], [0, 0, 1, 1], [], []>} : vector<8x32xbf16>, vector<32x128xbf16>, vector<8x128xf32> -> vector<8x128xf32>
    %5 = vector.broadcast %3 : vector<1x128xf32> to vector<8x128xf32>
    %6 = arith.addf %4, %5 : vector<8x128xf32>
    %cst_5 = arith.constant 0.000000e+00 : f32
    %7 = vector.broadcast %cst_5 : f32 to vector<8x128xf32>
    %8 = arith.maximumf %6, %7 : vector<8x128xf32>
    %c0_6 = arith.constant 0 : index
    %c0_7 = arith.constant 0 : index
    %9 = vector.load %arg4[%c0_6, %c0_7] : memref<1x128xf32, #tpu.memory_space<vmem>>, vector<1x128xf32>
    %10 = vector.broadcast %9 : vector<1x128xf32> to vector<8x128xf32>
    %11 = arith.addf %8, %10 : vector<8x128xf32>
    %cst_8 = arith.constant 0.000000e+00 : f32
    %12 = vector.broadcast %cst_8 : f32 to vector<8x128xf32>
    %13 = arith.maximumf %11, %12 : vector<8x128xf32>
    %14 = arith.truncf %13 : vector<8x128xf32> to vector<8x128xbf16>
    %c0_9 = arith.constant 0 : index
    %c0_10 = arith.constant 0 : index
    %15 = vector.load %arg5[%c0_9, %c0_10] : memref<128x128xbf16, #tpu.memory_space<vmem>>, vector<128x128xbf16>
    %c0_11 = arith.constant 0 : index
    %c0_12 = arith.constant 0 : index
    %16 = vector.load %arg6[%c0_11, %c0_12] : memref<1x128xf32, #tpu.memory_space<vmem>>, vector<1x128xf32>
    %cst_13 = arith.constant dense<0.000000e+00> : vector<8x128xf32>
    %17 = tpu.matmul %14, %15, %cst_13 {dimension_numbers = #tpu.dot_dimension_numbers<[1], [0], [0], [1], [0, 0, 1, 1], [], []>} : vector<8x128xbf16>, vector<128x128xbf16>, vector<8x128xf32> -> vector<8x128xf32>
    %18 = vector.broadcast %16 : vector<1x128xf32> to vector<8x128xf32>
    %19 = arith.addf %17, %18 : vector<8x128xf32>
    %c0_14 = arith.constant 0 : index
    %c0_15 = arith.constant 0 : index
    %20 = vector.load %arg7[%c0_14, %c0_15] : memref<8x128xf32, #tpu.memory_space<vmem>>, vector<8x128xf32>
    tpu.vector_store %arg7[%c0_14, %c0_15], %19 {strides = array<i32>} : memref<8x128xf32, #tpu.memory_space<vmem>>, vector<8x128xf32>,
    return
  }
  func.func @transform_0(%arg0: i32) -> (i32, i32) {
    %c0_i32 = arith.constant 0 : i32
    %c0_i32_0 = arith.constant 0 : i32
    return %arg0, %c0_i32 : i32, i32
  }
  func.func @transform_1(%arg0: i32) -> (i32, i32) {
    %c0_i32 = arith.constant 0 : i32
    %c0_i32_0 = arith.constant 0 : i32
    %c0_i32_1 = arith.constant 0 : i32
    return %c0_i32, %c0_i32_0 : i32, i32
  }
  func.func @transform_2(%arg0: i32) -> (i32, i32) {
    %c0_i32 = arith.constant 0 : i32
    %c0_i32_0 = arith.constant 0 : i32
    %c0_i32_1 = arith.constant 0 : i32
    return %c0_i32, %c0_i32_0 : i32, i32
  }
  func.func @transform_3(%arg0: i32) -> (i32, i32) {
    %c0_i32 = arith.constant 0 : i32
    %c0_i32_0 = arith.constant 0 : i32
    %c0_i32_1 = arith.constant 0 : i32
    return %c0_i32, %c0_i32_0 : i32, i32
  }
  func.func @transform_4(%arg0: i32) -> (i32, i32) {
    %c0_i32 = arith.constant 0 : i32
    %c0_i32_0 = arith.constant 0 : i32
    %c0_i32_1 = arith.constant 0 : i32
    return %c0_i32, %c0_i32_0 : i32, i32
  }
  func.func @transform_5(%arg0: i32) -> (i32, i32) {
    %c0_i32 = arith.constant 0 : i32
    %c0_i32_0 = arith.constant 0 : i32
    %c0_i32_1 = arith.constant 0 : i32
    return %c0_i32, %c0_i32_0 : i32, i32
  }
  func.func @transform_6(%arg0: i32) -> (i32, i32) {
    %c0_i32 = arith.constant 0 : i32
    %c0_i32_0 = arith.constant 0 : i32
    return %arg0, %c0_i32 : i32, i32
  }
}

</mosaic_0001>

<bundles_post_ra>
// kernel: mlp_forward.1
= control target key start
LH: loop header
LB: loop body
LE: loop exit
PB: predicated region body
PF: predicated region fallthrough
CT: control target
= control target key end

     0   :  { %11 = vsyncpa [#allocation3], 0  ;;  %s441_s0 = inlined_call_operand.hbm [shape: f32[8,32], index: 0, kind: input, shape index: {}]   ;;  %s442_s1 = inlined_call_operand.hbm [shape: bf16[32,128], index: 1, kind: input, shape index: {}]   ;;  %s443_s2 = inlined_call_operand.vmem [shape: f32[1,128], index: 2, kind: input, shape index: {}]   ;;  %s444_s3 = inlined_call_operand.vmem [shape: f32[1,128], index: 3, kind: input, shape index: {}]   ;;  %s445_s4 = inlined_call_operand.hbm [shape: bf16[128,128], index: 4, kind: input, shape index: {}]   ;;  %s446_s5 = inlined_call_operand.vmem [shape: f32[1,128], index: 5, kind: input, shape index: {}]   ;;  %s447_s6 = inlined_call_operand.hbm [shape: f32[8,128], index: 6, kind: output, shape index: {}]  }
   0x1   :  { %12 = vsyncpa [#allocation6], 0  ;;  %s29_s23 = sshll.u32 %s442_s1, 4  ;;  %s30_s23 = int_to_ptr.hbm [resolvable:$true] %s29_s23 }
   0x2   :  { %13 = vsyncpa [#allocation4], 0  ;;  %s379_s24 = smov [#allocation5]   ;;  %s19_s28 = sshll.u32 %s441_s0, 4  ;;  %s20_s28 = int_to_ptr.hbm [resolvable:$true] %s19_s28 }
   0x3   :  { %s31_s25 = sshll.u32 %s379_s24, 4  ;;  %s380_s29 = smov 64   ;;  %s32_s25 = int_to_ptr.vmem [resolvable:$true] %s31_s25 }
   0x4   :  { %s381_s30 = smov 4   ;;  %s382_s7 = smov [#allocation2]  }
   0x5   :  { %37 = dma.hbm_to_vmem [thread:$0]  %s30_s23, 256, %s32_s25, [#allocation6], %s380_s29, %s380_s29, %s381_s30  }
   0x6   :  { %s21_s8 = sshll.u32 %s382_s7, 4  ;;  %s46_s11 = sshll.u32 %s445_s4, 4  ;;  %s22_s8 = int_to_ptr.vmem [resolvable:$true] %s21_s8  ;;  %s47_s11 = int_to_ptr.hbm [resolvable:$true] %s46_s11 }
   0x7   :  { %24 = dma.hbm_to_vmem [thread:$0]  %s20_s28, 128, %s22_s8, [#allocation3]  }
   0x8   :  { %s383_s1 = smov [#allocation7]  }
   0x9   :  { %s48_s12 = sshll.u32 %s383_s1, 4  ;;  %s49_s12 = int_to_ptr.vmem [resolvable:$true] %s48_s12 }
   0xa   :  { %54 = dma.hbm_to_vmem [thread:$0]  %s47_s11, 1024, %s49_s12, [#allocation6], %s380_s29, %s380_s29, %s381_s30  }
   0xb   :  { %373 = dma.done.wait [#allocation3], 128  }
   0xc   :  { %374 = vsyncadd [#allocation3], 4294967168 }
   0xd   :  { %375 = dma.done.wait [#allocation6], 1280  }
   0xe   :  { %376 = vsyncadd [#allocation6], 4294966016  ;;  %v259_v0 = vld [vmem:[#allocation5 + $0x8] sm:$0xff]  ;;  %v258_v2 = vld [vmem:[#allocation5] sm:$0xff]  ;;  %vm92_vm0 = vcmask 261120   ;;  %s384_s17 = smov [#allocation8]  }
   0xf   :  { %v267_v1 = vld [vmem:[#allocation7 + $0x38] sm:$0xff]  ;;  %102 = vmatpush.bf16.msra.mxu0 %v259_v0  ;;  %v70_v3 = vld [vmem:[#allocation2] sm:$0xff]  ;;  %v266_v4 = vld [vmem:[#allocation7 + $0x30] sm:$0xff]  ;;  %s204_s18 = sshll.u32 %s384_s17, 4  ;;  %s206_s20 = sshll.u32 %s447_s6, 4  ;;  %s205_s18 = int_to_ptr.vmem [resolvable:$true] %s204_s18  ;;  %s207_s20 = int_to_ptr.hbm [resolvable:$true] %s206_s20 }
  0x10   :  { %185 = vmatpush.bf16.msra.mxu1 %v267_v1  ;;  %v71_v5 = vpack.c.bf16 %v70_v3, %v70_v3  ;;  %v265_v6 = vld [vmem:[#allocation7 + $0x28] sm:$0xff]  ;;  %v264_v7 = vld [vmem:[#allocation7 + $0x20] sm:$0xff]  ;;  %v263_v8 = vld [vmem:[#allocation7 + $0x18] sm:$0xff] }
  0x11   :  { %v262_v9 = vld [vmem:[#allocation7 + $0x10] sm:$0xff]  ;;  %v261_v10 = vld [vmem:[#allocation7 + $0x8] sm:$0xff]  ;;  %v260_v11 = vld [vmem:[#allocation7] sm:$0xff] }
  0x12   :  { %v274_v12 = vld [vmem:[%s443_s2] ss:$0 sm:$0xff] }
  0x13   :  { %103 = vmatpush.bf16.msra.mxu0 %v258_v2  ;;  %v275_v15 = vld [vmem:[%s444_s3] ss:$0 sm:$0xff] }
  0x14   :  { %186 = vmatpush.bf16.msra.mxu1 %v266_v4  ;;  %v276_v21 = vld [vmem:[%s446_s5] ss:$0 sm:$0xff] }
  0x16   :  { %225 = vmatmul.msk.bf16.vlgmr.msra.gmra.mxu0 %vm92_vm0, %v71_v5 }
  0x18   :  { %187 = vmatpush.bf16.msra.mxu1 %v265_v6 }
  0x1c   :  { %188 = vmatpush.bf16.msra.mxu1 %v264_v7 }
  0x20   :  { %189 = vmatpush.bf16.msra.mxu1 %v263_v8 }
  0x24   :  { %190 = vmatpush.bf16.msra.mxu1 %v262_v9 }
  0x28   :  { %191 = vmatpush.bf16.msra.mxu1 %v261_v10 }
  0x2c   :  { %192 = vmatpush.bf16.msra.mxu1 %v260_v11 }
  0x93   :  { %v105_v13 = vpop.f32.mrf.mxu0 }
  0x94   :  { %v106_v14 = vadd.f32 %v274_v12, %v105_v13 }
  0x96   :  { %v109_v16 = vmax.f32 %v106_v14, 0.0 }
  0x98   :  { %v114_v17 = vadd.f32 %v275_v15, %v109_v16 }
  0x9a   :  { %v115_v18 = vmax.f32 %v114_v17, 0.0 }
  0x9b   :  { %v107_v19 = vpop.f32.mrf.mxu0 }
  0x9c   :  { %v116_v20 = vpack.c.bf16 %v115_v18, %v115_v18 }
  0x9e   :  { %193 = vmatmul.bf16.vlgmr.msra.gmra.mxu1 %v116_v20 }
 0x11b   :  { %v194_v22 = vpop.f32.mrf.mxu1 }
 0x11c   :  { %v195_v23 = vadd.f32 %v276_v21, %v194_v22 }
 0x11e   :  { %198 = vst [vmem:[#allocation8] sm:$0xff] %v195_v23 }
 0x11f   :  { %209 = dma.vmem_to_hbm [thread:$0]  %s205_s18, 128, %s207_s20, [#allocation4]  }
 0x123   :  { %v196_v24 = vpop.f32.mrf.mxu1 }
 0x124   :  { %377 = dma.done.wait [#allocation4], 128  }
 0x125   :  { %378 = vsyncadd [#allocation4], 4294967168 }
 0x126   :  { %214 = vsyncpa [#allocation3], 1 }
 0x127   :  { %215 = vsyncpa [#allocation6], 1 }
 0x128   :  { %216 = vsyncpa [#allocation4], 1 }

// kernel: mlp_forward.1
= control target key start
LH: loop header
LB: loop body
LE: loop exit
PB: predicated region body
PF: predicated region fallthrough
CT: control target
= control target key end

     0   :  { %11 = vsyncpa [#allocation3], 0  ;;  %s441_s0 = inlined_call_operand.hbm [shape: f32[8,32], index: 0, kind: input, shape index: {}]   ;;  %s442_s1 = inlined_call_operand.hbm [shape: bf16[32,128], index: 1, kind: input, shape index: {}]   ;;  %s443_s2 = inlined_call_operand.vmem [shape: f32[1,128], index: 2, kind: input, shape index: {}]   ;;  %s444_s3 = inlined_call_operand.vmem [shape: f32[1,128], index: 3, kind: input, shape index: {}]   ;;  %s445_s4 = inlined_call_operand.hbm [shape: bf16[128,128], index: 4, kind: input, shape index: {}]   ;;  %s446_s5 = inlined_call_operand.vmem [shape: f32[1,128], index: 5, kind: input, shape index: {}]   ;;  %s447_s6 = inlined_call_operand.hbm [shape: f32[8,128], index: 6, kind: output, shape index: {}]  }
   0x1   :  { %12 = vsyncpa [#allocation6], 0  ;;  %s29_s23 = sshll.u32 %s442_s1, 4  ;;  %s30_s23 = int_to_ptr.hbm [resolvable:$true] %s29_s23 }
   0x2   :  { %13 = vsyncpa [#allocation4], 0  ;;  %s379_s24 = smov [#allocation5]   ;;  %s19_s28 = sshll.u32 %s441_s0, 4  ;;  %s20_s28 = int_to_ptr.hbm [resolvable:$true] %s19_s28 }
   0x3   :  { %s31_s25 = sshll.u32 %s379_s24, 4  ;;  %s380_s29 = smov 64   ;;  %s32_s25 = int_to_ptr.vmem [resolvable:$true] %s31_s25 }
   0x4   :  { %s381_s30 = smov 4   ;;  %s382_s7 = smov [#allocation2]  }
   0x5   :  { %37 = dma.hbm_to_vmem [thread:$0]  %s30_s23, 256, %s32_s25, [#allocation6], %s380_s29, %s380_s29, %s381_s30  }
   0x6   :  { %s21_s8 = sshll.u32 %s382_s7, 4  ;;  %s46_s11 = sshll.u32 %s445_s4, 4  ;;  %s22_s8 = int_to_ptr.vmem [resolvable:$true] %s21_s8  ;;  %s47_s11 = int_to_ptr.hbm [resolvable:$true] %s46_s11 }
   0x7   :  { %24 = dma.hbm_to_vmem [thread:$0]  %s20_s28, 128, %s22_s8, [#allocation3]  }
   0x8   :  { %s383_s1 = smov [#allocation7]  }
   0x9   :  { %s48_s12 = sshll.u32 %s383_s1, 4  ;;  %s49_s12 = int_to_ptr.vmem [resolvable:$true] %s48_s12 }
   0xa   :  { %54 = dma.hbm_to_vmem [thread:$0]  %s47_s11, 1024, %s49_s12, [#allocation6], %s380_s29, %s380_s29, %s381_s30  }
   0xb   :  { %373 = dma.done.wait [#allocation3], 128  }
   0xc   :  { %374 = vsyncadd [#allocation3], 4294967168 }
   0xd   :  { %375 = dma.done.wait [#allocation6], 1280  }
   0xe   :  { %376 = vsyncadd [#allocation6], 4294966016  ;;  %v259_v0 = vld [vmem:[#allocation5 + $0x8] sm:$0xff]  ;;  %v258_v2 = vld [vmem:[#allocation5] sm:$0xff]  ;;  %vm92_vm0 = vcmask 261120   ;;  %s384_s17 = smov [#allocation8]  }
   0xf   :  { %v267_v1 = vld [vmem:[#allocation7 + $0x38] sm:$0xff]  ;;  %102 = vmatpush.bf16.msra.mxu0 %v259_v0  ;;  %v70_v3 = vld [vmem:[#allocation2] sm:$0xff]  ;;  %v266_v4 = vld [vmem:[#allocation7 + $0x30] sm:$0xff]  ;;  %s204_s18 = sshll.u32 %s384_s17, 4  ;;  %s206_s20 = sshll.u32 %s447_s6, 4  ;;  %s205_s18 = int_to_ptr.vmem [resolvable:$true] %s204_s18  ;;  %s207_s20 = int_to_ptr.hbm [resolvable:$true] %s206_s20 }
  0x10   :  { %185 = vmatpush.bf16.msra.mxu1 %v267_v1  ;;  %v71_v5 = vpack.c.bf16 %v70_v3, %v70_v3  ;;  %v265_v6 = vld [vmem:[#allocation7 + $0x28] sm:$0xff]  ;;  %v264_v7 = vld [vmem:[#allocation7 + $0x20] sm:$0xff]  ;;  %v263_v8 = vld [vmem:[#allocation7 + $0x18] sm:$0xff] }
  0x11   :  { %v262_v9 = vld [vmem:[#allocation7 + $0x10] sm:$0xff]  ;;  %v261_v10 = vld [vmem:[#allocation7 + $0x8] sm:$0xff]  ;;  %v260_v11 = vld [vmem:[#allocation7] sm:$0xff] }
  0x12   :  { %v274_v12 = vld [vmem:[%s443_s2] ss:$0 sm:$0xff] }
  0x13   :  { %103 = vmatpush.bf16.msra.mxu0 %v258_v2  ;;  %v275_v15 = vld [vmem:[%s444_s3] ss:$0 sm:$0xff] }
  0x14   :  { %186 = vmatpush.bf16.msra.mxu1 %v266_v4  ;;  %v276_v21 = vld [vmem:[%s446_s5] ss:$0 sm:$0xff] }
  0x16   :  { %225 = vmatmul.msk.bf16.vlgmr.msra.gmra.mxu0 %vm92_vm0, %v71_v5 }
  0x18   :  { %187 = vmatpush.bf16.msra.mxu1 %v265_v6 }
  0x1c   :  { %188 = vmatpush.bf16.msra.mxu1 %v264_v7 }
  0x20   :  { %189 = vmatpush.bf16.msra.mxu1 %v263_v8 }
  0x24   :  { %190 = vmatpush.bf16.msra.mxu1 %v262_v9 }
  0x28   :  { %191 = vmatpush.bf16.msra.mxu1 %v261_v10 }
  0x2c   :  { %192 = vmatpush.bf16.msra.mxu1 %v260_v11 }
  0x93   :  { %v105_v13 = vpop.f32.mrf.mxu0 }
  0x94   :  { %v106_v14 = vadd.f32 %v274_v12, %v105_v13 }
  0x96   :  { %v109_v16 = vmax.f32 %v106_v14, 0.0 }
  0x98   :  { %v114_v17 = vadd.f32 %v275_v15, %v109_v16 }
  0x9a   :  { %v115_v18 = vmax.f32 %v114_v17, 0.0 }
  0x9b   :  { %v107_v19 = vpop.f32.mrf.mxu0 }
  0x9c   :  { %v116_v20 = vpack.c.bf16 %v115_v18, %v115_v18 }
  0x9e   :  { %193 = vmatmul.bf16.vlgmr.msra.gmra.mxu1 %v116_v20 }
 0x11b   :  { %v194_v22 = vpop.f32.mrf.mxu1 }
 0x11c   :  { %v195_v23 = vadd.f32 %v276_v21, %v194_v22 }
 0x11e   :  { %198 = vst [vmem:[#allocation8] sm:$0xff] %v195_v23 }
 0x11f   :  { %209 = dma.vmem_to_hbm [thread:$0]  %s205_s18, 128, %s207_s20, [#allocation4]  }
 0x123   :  { %v196_v24 = vpop.f32.mrf.mxu1 }
 0x124   :  { %377 = dma.done.wait [#allocation4], 128  }
 0x125   :  { %378 = vsyncadd [#allocation4], 4294967168 }
 0x126   :  { %214 = vsyncpa [#allocation3], 1 }
 0x127   :  { %215 = vsyncpa [#allocation6], 1 }
 0x128   :  { %216 = vsyncpa [#allocation4], 1 }

</bundles_post_ra>
